<compile_context>
chip_gen: v5e
topology: v5e:2x2
jax: 0.10.0
libtpu: 0.0.40
codegen_flags: <defaults>
</compile_context>

<pallas_src>
import math

import jax
import jax.numpy as jnp
from jax.experimental import pallas as pl
from jax.experimental.pallas import tpu as pltpu

_NEG_BIG = -1e30  # logit bias for padded output classes -> exp() underflows to 0


def _round_up(n, m):
    return ((n + m - 1) // m) * m


def _mlp_softmax_kernel(x_ref, w1_ref, b1_ref, w2_ref, b2_ref, w3_ref, b3_ref,
                        o_ref):
    """One batch tile: 3 matmuls + LeakyReLU + softmax, fully fused."""
    neg_slope = jnp.float32(0.01)

    # Cast x to the MXU operand dtype here (VPU cast, hidden under the DMA).
    x = x_ref[...].astype(w1_ref.dtype)

    # Layer 1: Linear + LeakyReLU (f32 accumulate, f32 elementwise)
    h1 = jnp.dot(x, w1_ref[...], preferred_element_type=jnp.float32) + b1_ref[...]
    h1 = jnp.where(h1 >= 0, h1, neg_slope * h1)

    # Layer 2: Linear + LeakyReLU
    h2 = jnp.dot(h1.astype(w2_ref.dtype), w2_ref[...],
                 preferred_element_type=jnp.float32) + b2_ref[...]
    h2 = jnp.where(h2 >= 0, h2, neg_slope * h2)

    # Layer 3: Linear (output columns padded to a lane-dense multiple of 128;
    # padded columns carry a -1e30 bias so they vanish in the softmax)
    logits = jnp.dot(h2.astype(w3_ref.dtype), w3_ref[...],
                     preferred_element_type=jnp.float32) + b3_ref[...]

    # Numerically stable softmax, EXACT normalization (rows must sum to 1 if
    # the output feeds a categorical sampler / log-prob loss; the kernel is
    # nowhere near EUP/VALU-bound, so the exact divide costs nothing).
    m = jnp.max(logits, axis=-1, keepdims=True)
    e = jnp.exp(logits - m)
    denom = jnp.sum(e, axis=-1, keepdims=True)
    o_ref[...] = (e / denom).astype(o_ref.dtype)


def init_params(key, in_features, out_features, hidden_size):
    """Deterministic kaiming_normal_(a=0.01) init (fan_in mode), zero biases."""
    h2 = hidden_size // 2
    a = 0.01
    gain = math.sqrt(2.0 / (1.0 + a * a))

    def kaiming(k, fan_in, fan_out):
        std = gain / math.sqrt(fan_in)
        # stored as (fan_in, fan_out) so the kernel computes x @ W
        return std * jax.random.normal(k, (fan_in, fan_out), dtype=jnp.float32)

    k1, k2, k3 = jax.random.split(key, 3)
    return {
        "w1": kaiming(k1, in_features, h2),
        "b1": jnp.zeros((1, h2), dtype=jnp.float32),
        "w2": kaiming(k2, h2, hidden_size),
        "b2": jnp.zeros((1, hidden_size), dtype=jnp.float32),
        "w3": kaiming(k3, hidden_size, out_features),
        "b3": jnp.zeros((1, out_features), dtype=jnp.float32),
    }


def prepare_params(params, *, compute_dtype=jnp.float32):
    """One-time param prep hoisted out of forward():

    * zero-pad hidden widths to a multiple of 128 lanes (mathematically exact:
      padded activations are exactly 0 through LeakyReLU and feed zero rows),
    * pad the output layer to a lane-dense multiple of 128 columns with -1e30
      biases on the padded classes (exactly 0 softmax mass),
    * pre-cast weights to the MXU operand dtype (biases stay f32).
    """
    w1, b1 = params["w1"], params["b1"]
    w2, b2 = params["w2"], params["b2"]
    w3, b3 = params["w3"], params["b3"]

    h2 = w1.shape[1]
    h = w2.shape[1]
    out_features = w3.shape[1]

    h2_pad = _round_up(h2, 128)
    h_pad = _round_up(h, 128)
    n_pad = _round_up(out_features, 128)

    w1p = jnp.pad(w1, ((0, 0), (0, h2_pad - h2)))
    b1p = jnp.pad(b1, ((0, 0), (0, h2_pad - h2)))
    w2p = jnp.pad(w2, ((0, h2_pad - h2), (0, h_pad - h)))
    b2p = jnp.pad(b2, ((0, 0), (0, h_pad - h)))
    w3p = jnp.pad(w3, ((0, h_pad - h), (0, n_pad - out_features)))
    b3p = jnp.pad(b3, ((0, 0), (0, n_pad - out_features)),
                  constant_values=_NEG_BIG)

    return {
        "w1": w1p.astype(compute_dtype), "b1": b1p.astype(jnp.float32),
        "w2": w2p.astype(compute_dtype), "b2": b2p.astype(jnp.float32),
        "w3": w3p.astype(compute_dtype), "b3": b3p.astype(jnp.float32),
        "out_features": out_features,
    }


def discrete_gradient_policy_forward(x, prepared, *, block_b=1024,
                                     out_dtype=jnp.float32,
                                     return_padded=False):
    """x: (B, in_features) float32.  prepared: output of prepare_params().

    block_b:       max rows per grid step (batch tile), multiple of 8.
    out_dtype:     output dtype (f32 by default; bf16 halves writeback bytes).
    return_padded: if True, return the lane-dense (B, n_pad) slab directly
                   (padded classes have exactly 0 probability), skipping the
                   strided column-slice HBM copy.
    """
    w1, b1 = prepared["w1"], prepared["b1"]
    w2, b2 = prepared["w2"], prepared["b2"]
    w3, b3 = prepared["w3"], prepared["b3"]
    out_features = prepared["out_features"]

    B, in_features = x.shape
    assert in_features == w1.shape[0]
    h2_pad, h_pad, n_pad = w1.shape[1], w2.shape[1], w3.shape[1]

    # --- batch tiling: ragged last block is masked by Pallas (no wrapper pad) ---
    tile_b = min(block_b, _round_up(B, 8))
    num_blocks = pl.cdiv(B, tile_b)
    # v7x has 2 TensorCores: keep the block count even so the "parallel" grid
    # axis splits evenly across them (no-op for grid=(1,) or 1-TC chips).
    if num_blocks > 1 and num_blocks % 2 == 1:
        tile_b = _round_up(pl.cdiv(B, num_blocks + 1), 8)
        num_blocks = pl.cdiv(B, tile_b)

    def full_spec(arr):
        return pl.BlockSpec(arr.shape, lambda i: (0, 0))  # grid-invariant, resident

    flops = 2 * B * (in_features * h2_pad + h2_pad * h_pad + h_pad * n_pad)
    bytes_accessed = (
        x.size * x.dtype.itemsize
        + B * n_pad * jnp.dtype(out_dtype).itemsize
        + sum(a.size * a.dtype.itemsize for a in (w1, b1, w2, b2, w3, b3)))
    cost = pl.CostEstimate(flops=flops, transcendentals=B * n_pad,
                           bytes_accessed=bytes_accessed)

    out = pl.pallas_call(
        _mlp_softmax_kernel,
        out_shape=jax.ShapeDtypeStruct((B, n_pad), out_dtype),
        grid=(num_blocks,),
        in_specs=[
            pl.BlockSpec((tile_b, in_features), lambda i: (i, 0)),  # streamed x
            full_spec(w1), full_spec(b1),
            full_spec(w2), full_spec(b2),
            full_spec(w3), full_spec(b3),
        ],
        out_specs=pl.BlockSpec((tile_b, n_pad), lambda i: (i, 0)),
        compiler_params=pltpu.CompilerParams(
            dimension_semantics=("parallel",),
            vmem_limit_bytes=32 * 1024 * 1024),
        cost_estimate=cost,
    )(x, w1, b1, w2, b2, w3, b3)

    if return_padded:
        return out  # (B, n_pad); columns >= out_features carry exactly 0 mass
    return out[:, :out_features]


def _reference_forward(x, p):
    """Plain-JAX reference (unpadded params) for sanity checking."""
    h = x @ p["w1"] + p["b1"]
    h = jnp.where(h >= 0, h, 0.01 * h)
    h = h @ p["w2"] + p["b2"]
    h = jnp.where(h >= 0, h, 0.01 * h)
    logits = h @ p["w3"] + p["b3"]
    return jax.nn.softmax(logits, axis=-1)


if __name__ == "__main__":
    in_features, out_features, hidden_size = 16, 8, 32
    batch = 8

    key = jax.random.PRNGKey(0)
    k_param, k_x, k_big = jax.random.split(key, 3)
    params = init_params(k_param, in_features, out_features, hidden_size)

    # One-time parameter prep (padding + casting hoisted out of forward()).
    prep_f32 = prepare_params(params)
    prep_bf16 = prepare_params(params, compute_dtype=jnp.bfloat16)

    # Small batch (matches the toy module usage).
    x = jax.random.normal(k_x, (batch, in_features), dtype=jnp.float32)
    out = jax.block_until_ready(discrete_gradient_policy_forward(x, prep_f32))
    ref = _reference_forward(x, params)
    assert out.shape == (batch, out_features)
    assert jnp.allclose(out, ref, atol=2e-3, rtol=2e-3)
    # Exact softmax normalization (no approx reciprocal): rows sum to 1.
    assert jnp.allclose(jnp.sum(out, axis=-1), jnp.ones((batch,)), atol=1e-4)

    # Larger ragged batch with a multi-block grid (block_b override keeps the
    # test small while exercising grid=(4,) and the masked last block).
    xb = jax.random.normal(k_big, (500, in_features), dtype=jnp.float32)
    outb = jax.block_until_ready(
        discrete_gradient_policy_forward(xb, prep_f32, block_b=128))
    refb = _reference_forward(xb, params)
    assert outb.shape == (500, out_features)
    assert jnp.allclose(outb, refb, atol=2e-3, rtol=2e-3)
    assert jnp.allclose(jnp.sum(outb, axis=-1), jnp.ones((500,)), atol=1e-4)

    # bf16 MXU-operand path (weights pre-cast once, x cast in-kernel); output,
    # accumulation and softmax stay f32, so rows still sum to 1 exactly.
    outbf = jax.block_until_ready(
        discrete_gradient_policy_forward(xb, prep_bf16, block_b=128))
    assert outbf.shape == (500, out_features)
    assert jnp.allclose(outbf, refb, atol=3e-2)
    assert jnp.allclose(jnp.sum(outbf, axis=-1), jnp.ones((500,)), atol=1e-4)

    print("KERNEL_OK")
</pallas_src>

<mosaic_0001>
module attributes {stable_mosaic.version = 11 : i64} {
  func.func @_mlp_softmax_kernel(%arg0: i32, %arg1: memref<8x16xf32, #tpu.memory_space<vmem>>, %arg2: memref<16x128xf32, #tpu.memory_space<vmem>>, %arg3: memref<1x128xf32, #tpu.memory_space<vmem>>, %arg4: memref<128x128xf32, #tpu.memory_space<vmem>>, %arg5: memref<1x128xf32, #tpu.memory_space<vmem>>, %arg6: memref<128x128xf32, #tpu.memory_space<vmem>>, %arg7: memref<1x128xf32, #tpu.memory_space<vmem>>, %arg8: memref<8x128xf32, #tpu.memory_space<vmem>>) attributes {dimension_semantics = [#tpu.dimension_semantics<parallel>], iteration_bounds = array<i64: 1>, scalar_prefetch = 0 : i64, scratch_operands = 0 : i64, tpu.core_type = #tpu.core_type<tc>, window_params = [{transform_indices = @transform_0, window_bounds = array<i64: 8, 16>}, {pipeline_mode = #tpu.pipeline_mode<synchronous>, transform_indices = @transform_1, window_bounds = array<i64: 16, 128>}, {pipeline_mode = #tpu.pipeline_mode<synchronous>, transform_indices = @transform_2, window_bounds = array<i64: 1, 128>}, {pipeline_mode = #tpu.pipeline_mode<synchronous>, transform_indices = @transform_3, window_bounds = array<i64: 128, 128>}, {pipeline_mode = #tpu.pipeline_mode<synchronous>, transform_indices = @transform_4, window_bounds = array<i64: 1, 128>}, {pipeline_mode = #tpu.pipeline_mode<synchronous>, transform_indices = @transform_5, window_bounds = array<i64: 128, 128>}, {pipeline_mode = #tpu.pipeline_mode<synchronous>, transform_indices = @transform_6, window_bounds = array<i64: 1, 128>}, {transform_indices = @transform_7, window_bounds = array<i64: 8, 128>}]} {
    %c0 = arith.constant 0 : index
    %c0_0 = arith.constant 0 : index
    %0 = vector.load %arg1[%c0, %c0_0] : memref<8x16xf32, #tpu.memory_space<vmem>>, vector<8x16xf32>
    %c0_1 = arith.constant 0 : index
    %c0_2 = arith.constant 0 : index
    %1 = vector.load %arg2[%c0_1, %c0_2] : memref<16x128xf32, #tpu.memory_space<vmem>>, vector<16x128xf32>
    %cst = arith.constant dense<0.000000e+00> : vector<8x128xf32>
    %2 = tpu.matmul %0, %1, %cst {dimension_numbers = #tpu.dot_dimension_numbers<[1], [0], [0], [1], [0, 0, 1, 1], [], []>} : vector<8x16xf32>, vector<16x128xf32>, vector<8x128xf32> -> vector<8x128xf32>
    %c0_3 = arith.constant 0 : index
    %c0_4 = arith.constant 0 : index
    %3 = vector.load %arg3[%c0_3, %c0_4] : memref<1x128xf32, #tpu.memory_space<vmem>>, vector<1x128xf32>
    %4 = vector.broadcast %3 : vector<1x128xf32> to vector<8x128xf32>
    %5 = arith.addf %2, %4 : vector<8x128xf32>
    %cst_5 = arith.constant 0.000000e+00 : f32
    %6 = vector.broadcast %cst_5 : f32 to vector<8x128xf32>
    %7 = arith.cmpf oge, %5, %6 : vector<8x128xf32>
    %cst_6 = arith.constant 0.00999999977 : f32
    %8 = vector.broadcast %cst_6 : f32 to vector<8x128xf32>
    %9 = arith.mulf %8, %5 : vector<8x128xf32>
    %10 = arith.select %7, %5, %9 : vector<8x128xi1>, vector<8x128xf32>
    %c0_7 = arith.constant 0 : index
    %c0_8 = arith.constant 0 : index
    %11 = vector.load %arg4[%c0_7, %c0_8] : memref<128x128xf32, #tpu.memory_space<vmem>>, vector<128x128xf32>
    %cst_9 = arith.constant dense<0.000000e+00> : vector<8x128xf32>
    %12 = tpu.matmul %10, %11, %cst_9 {dimension_numbers = #tpu.dot_dimension_numbers<[1], [0], [0], [1], [0, 0, 1, 1], [], []>} : vector<8x128xf32>, vector<128x128xf32>, vector<8x128xf32> -> vector<8x128xf32>
    %c0_10 = arith.constant 0 : index
    %c0_11 = arith.constant 0 : index
    %13 = vector.load %arg5[%c0_10, %c0_11] : memref<1x128xf32, #tpu.memory_space<vmem>>, vector<1x128xf32>
    %14 = vector.broadcast %13 : vector<1x128xf32> to vector<8x128xf32>
    %15 = arith.addf %12, %14 : vector<8x128xf32>
    %cst_12 = arith.constant 0.000000e+00 : f32
    %16 = vector.broadcast %cst_12 : f32 to vector<8x128xf32>
    %17 = arith.cmpf oge, %15, %16 : vector<8x128xf32>
    %cst_13 = arith.constant 0.00999999977 : f32
    %18 = vector.broadcast %cst_13 : f32 to vector<8x128xf32>
    %19 = arith.mulf %18, %15 : vector<8x128xf32>
    %20 = arith.select %17, %15, %19 : vector<8x128xi1>, vector<8x128xf32>
    %c0_14 = arith.constant 0 : index
    %c0_15 = arith.constant 0 : index
    %21 = vector.load %arg6[%c0_14, %c0_15] : memref<128x128xf32, #tpu.memory_space<vmem>>, vector<128x128xf32>
    %cst_16 = arith.constant dense<0.000000e+00> : vector<8x128xf32>
    %22 = tpu.matmul %20, %21, %cst_16 {dimension_numbers = #tpu.dot_dimension_numbers<[1], [0], [0], [1], [0, 0, 1, 1], [], []>} : vector<8x128xf32>, vector<128x128xf32>, vector<8x128xf32> -> vector<8x128xf32>
    %c0_17 = arith.constant 0 : index
    %c0_18 = arith.constant 0 : index
    %23 = vector.load %arg7[%c0_17, %c0_18] : memref<1x128xf32, #tpu.memory_space<vmem>>, vector<1x128xf32>
    %24 = vector.broadcast %23 : vector<1x128xf32> to vector<8x128xf32>
    %25 = arith.addf %22, %24 : vector<8x128xf32>
    %cst_19 = arith.constant dense<0xFF800000> : vector<8xf32>
    %26 = vector.multi_reduction <maximumf>, %25, %cst_19 [1] : vector<8x128xf32> to vector<8xf32>
    %27 = vector.shape_cast %26 : vector<8xf32> to vector<8x1xf32>
    %28 = vector.broadcast %27 : vector<8x1xf32> to vector<8x128xf32>
    %29 = arith.subf %25, %28 : vector<8x128xf32>
    %30 = math.exp %29 : vector<8x128xf32>
    %cst_20 = arith.constant dense<0.000000e+00> : vector<8xf32>
    %31 = vector.multi_reduction <add>, %30, %cst_20 [1] : vector<8x128xf32> to vector<8xf32>
    %32 = vector.shape_cast %31 : vector<8xf32> to vector<8x1xf32>
    %33 = vector.broadcast %32 : vector<8x1xf32> to vector<8x128xf32>
    %34 = arith.divf %30, %33 : vector<8x128xf32>
    %c0_21 = arith.constant 0 : index
    %c0_22 = arith.constant 0 : index
    %35 = vector.load %arg8[%c0_21, %c0_22] : memref<8x128xf32, #tpu.memory_space<vmem>>, vector<8x128xf32>
    tpu.vector_store %arg8[%c0_21, %c0_22], %34 {strides = array<i32>} : memref<8x128xf32, #tpu.memory_space<vmem>>, vector<8x128xf32>,
    return
  }
  func.func @transform_0(%arg0: i32) -> (i32, i32) {
    %c0_i32 = arith.constant 0 : i32
    %c0_i32_0 = arith.constant 0 : i32
    return %arg0, %c0_i32 : i32, i32
  }
  func.func @transform_1(%arg0: i32) -> (i32, i32) {
    %c0_i32 = arith.constant 0 : i32
    %c0_i32_0 = arith.constant 0 : i32
    %c0_i32_1 = arith.constant 0 : i32
    return %c0_i32, %c0_i32_0 : i32, i32
  }
  func.func @transform_2(%arg0: i32) -> (i32, i32) {
    %c0_i32 = arith.constant 0 : i32
    %c0_i32_0 = arith.constant 0 : i32
    %c0_i32_1 = arith.constant 0 : i32
    return %c0_i32, %c0_i32_0 : i32, i32
  }
  func.func @transform_3(%arg0: i32) -> (i32, i32) {
    %c0_i32 = arith.constant 0 : i32
    %c0_i32_0 = arith.constant 0 : i32
    %c0_i32_1 = arith.constant 0 : i32
    return %c0_i32, %c0_i32_0 : i32, i32
  }
  func.func @transform_4(%arg0: i32) -> (i32, i32) {
    %c0_i32 = arith.constant 0 : i32
    %c0_i32_0 = arith.constant 0 : i32
    %c0_i32_1 = arith.constant 0 : i32
    return %c0_i32, %c0_i32_0 : i32, i32
  }
  func.func @transform_5(%arg0: i32) -> (i32, i32) {
    %c0_i32 = arith.constant 0 : i32
    %c0_i32_0 = arith.constant 0 : i32
    %c0_i32_1 = arith.constant 0 : i32
    return %c0_i32, %c0_i32_0 : i32, i32
  }
  func.func @transform_6(%arg0: i32) -> (i32, i32) {
    %c0_i32 = arith.constant 0 : i32
    %c0_i32_0 = arith.constant 0 : i32
    %c0_i32_1 = arith.constant 0 : i32
    return %c0_i32, %c0_i32_0 : i32, i32
  }
  func.func @transform_7(%arg0: i32) -> (i32, i32) {
    %c0_i32 = arith.constant 0 : i32
    %c0_i32_0 = arith.constant 0 : i32
    return %arg0, %c0_i32 : i32, i32
  }
}

</mosaic_0001>

<bundles_post_ra>
// kernel: tpu_custom_call.1
= control target key start
LH: loop header
LB: loop body
LE: loop exit
PB: predicated region body
PF: predicated region fallthrough
CT: control target
= control target key end

     0   :  { %12 = vsyncpa [#allocation3], 0  ;;  %s461_s0 = inlined_call_operand.hbm [shape: f32[8,16], index: 0, kind: input, shape index: {}]   ;;  %s462_s1 = inlined_call_operand.hbm [shape: f32[16,128], index: 1, kind: input, shape index: {}]   ;;  %s463_s2 = inlined_call_operand.vmem [shape: f32[1,128], index: 2, kind: input, shape index: {}]   ;;  %s464_s3 = inlined_call_operand.hbm [shape: f32[128,128], index: 3, kind: input, shape index: {}]   ;;  %s465_s4 = inlined_call_operand.vmem [shape: f32[1,128], index: 4, kind: input, shape index: {}]   ;;  %s466_s5 = inlined_call_operand.hbm [shape: f32[128,128], index: 5, kind: input, shape index: {}]   ;;  %s467_s6 = inlined_call_operand.vmem [shape: f32[1,128], index: 6, kind: input, shape index: {}]   ;;  %s468_s7 = inlined_call_operand.hbm [shape: f32[8,128], index: 7, kind: output, shape index: {}]  }
   0x1   :  { %13 = vsyncpa [#allocation6], 0 }
   0x2   :  { %14 = vsyncpa [#allocation9], 0  ;;  %s31_s26 = sshll.u32 %s462_s1, 4  ;;  %s32_s26 = int_to_ptr.hbm [resolvable:$true] %s31_s26 }
   0x3   :  { %15 = vsyncpa [#allocation4], 0  ;;  %s390_s27 = smov [#allocation5]   ;;  %s21_s8 = sshll.u32 %s461_s0, 4  ;;  %s22_s8 = int_to_ptr.hbm [resolvable:$true] %s21_s8 }
   0x4   :  { %s33_s28 = sshll.u32 %s390_s27, 4  ;;  %s391_s9 = smov 128   ;;  %s34_s28 = int_to_ptr.vmem [resolvable:$true] %s33_s28 }
   0x5   :  { %s392_s10 = smov 8   ;;  %s393_s11 = smov [#allocation2]  }
   0x6   :  { %39 = dma.hbm_to_vmem [thread:$0]  %s32_s26, 256, %s34_s28, [#allocation6], %s391_s9, %s391_s9, %s392_s10  }
   0x7   :  { %s23_s12 = sshll.u32 %s393_s11, 4  ;;  %s46_s15 = sshll.u32 %s464_s3, 4  ;;  %s24_s12 = int_to_ptr.vmem [resolvable:$true] %s23_s12  ;;  %s47_s15 = int_to_ptr.hbm [resolvable:$true] %s46_s15 }
   0x8   :  { %26 = dma.hbm_to_vmem [thread:$0]  %s22_s8, 128, %s24_s12, [#allocation3]  }
   0x9   :  { %s61_s17 = sshll.u32 %s466_s5, 4  ;;  %s394_s18 = smov [#allocation7]   ;;  %s62_s17 = int_to_ptr.hbm [resolvable:$true] %s61_s17 }
   0xa   :  { %s48_s19 = sshll.u32 %s394_s18, 4  ;;  %s395_s0 = smov [#allocation8]   ;;  %s49_s19 = int_to_ptr.vmem [resolvable:$true] %s48_s19 }
   0xb   :  { %54 = dma.hbm_to_vmem [thread:$0]  %s47_s15, 2048, %s49_s19, [#allocation6], %s391_s9, %s391_s9, %s392_s10  }
   0xc   :  { %s63_s20 = sshll.u32 %s395_s0, 4  ;;  %s64_s20 = int_to_ptr.vmem [resolvable:$true] %s63_s20 }
   0xd   :  { %69 = dma.hbm_to_vmem [thread:$0]  %s62_s17, 2048, %s64_s20, [#allocation9], %s391_s9, %s391_s9, %s392_s10  }
   0xe   :  { %382 = dma.done.wait [#allocation3], 128  }
   0xf   :  { %383 = vsyncadd [#allocation3], 4294967168 }
  0x10   :  { %384 = dma.done.wait [#allocation6], 2304  }
  0x11   :  { %385 = vsyncadd [#allocation6], 4294964992 }
  0x12   :  { %386 = dma.done.wait [#allocation9], 2048  }
  0x13   :  { %387 = vsyncadd [#allocation9], 4294965248  ;;  %v90_v0 = vld [vmem:[#allocation5 + $0x8] sm:$0xff]  ;;  %v89_v1 = vld [vmem:[#allocation5] sm:$0xff]  ;;  %vm95_vm0 = vcmask 130048   ;;  %s235_s26 = sshll.u32 %s468_s7, 4  ;;  %s236_s26 = int_to_ptr.hbm [resolvable:$true] %s235_s26 }
  0x14   :  { %113 = vmatpush.msra.mxu0 %v90_v0  ;;  %v88_v2 = vld [vmem:[#allocation2] sm:$0xff]  ;;  %v137_v3 = vld [vmem:[#allocation7 + $0x78] sm:$0xff]  ;;  %v136_v4 = vld [vmem:[#allocation7 + $0x70] sm:$0xff] }
  0x15   :  { %142 = vmatpush.msra.mxu1 %v137_v3  ;;  %v135_v5 = vld [vmem:[#allocation7 + $0x68] sm:$0xff]  ;;  %v134_v6 = vld [vmem:[#allocation7 + $0x60] sm:$0xff]  ;;  %v133_v7 = vld [vmem:[#allocation7 + $0x58] sm:$0xff] }
  0x16   :  { %114 = vmatpush.msra.mxu0 %v89_v1  ;;  %v132_v8 = vld [vmem:[#allocation7 + $0x50] sm:$0xff]  ;;  %v131_v9 = vld [vmem:[#allocation7 + $0x48] sm:$0xff]  ;;  %v130_v10 = vld [vmem:[#allocation7 + $0x40] sm:$0xff] }
  0x17   :  { %247 = vmatmul.msk.f32.vlgmr.msra.gmra.mxu0 %vm95_vm0, %v88_v2  ;;  %143 = vmatpush.msra.mxu1 %v136_v4  ;;  %v129_v11 = vld [vmem:[#allocation7 + $0x38] sm:$0xff]  ;;  %v128_v12 = vld [vmem:[#allocation7 + $0x30] sm:$0xff]  ;;  %v127_v13 = vld [vmem:[#allocation7 + $0x28] sm:$0xff] }
  0x18   :  { %v126_v14 = vld [vmem:[#allocation7 + $0x20] sm:$0xff]  ;;  %v125_v15 = vld [vmem:[#allocation7 + $0x18] sm:$0xff]  ;;  %v124_v16 = vld [vmem:[#allocation7 + $0x10] sm:$0xff] }
  0x19   :  { %144 = vmatpush.msra.mxu1 %v135_v5  ;;  %v123_v17 = vld [vmem:[#allocation7 + $0x8] sm:$0xff]  ;;  %v122_v18 = vld [vmem:[#allocation7] sm:$0xff]  ;;  %v180_v19 = vld [vmem:[#allocation8 + $0x78] sm:$0xff] }
  0x1a   :  { %v179_v20 = vld [vmem:[#allocation8 + $0x70] sm:$0xff]  ;;  %185 = vmatpush.msra.mxu2 %v180_v19  ;;  %v178_v21 = vld [vmem:[#allocation8 + $0x68] sm:$0xff]  ;;  %v177_v22 = vld [vmem:[#allocation8 + $0x60] sm:$0xff] }
  0x1b   :  { %145 = vmatpush.msra.mxu1 %v134_v6  ;;  %v176_v23 = vld [vmem:[#allocation8 + $0x58] sm:$0xff]  ;;  %v175_v24 = vld [vmem:[#allocation8 + $0x50] sm:$0xff]  ;;  %v174_v25 = vld [vmem:[#allocation8 + $0x48] sm:$0xff] }
  0x1c   :  { %186 = vmatpush.msra.mxu2 %v179_v20  ;;  %v173_v26 = vld [vmem:[#allocation8 + $0x40] sm:$0xff]  ;;  %v172_v27 = vld [vmem:[#allocation8 + $0x38] sm:$0xff]  ;;  %v171_v28 = vld [vmem:[#allocation8 + $0x30] sm:$0xff] }
  0x1d   :  { %146 = vmatpush.msra.mxu1 %v133_v7  ;;  %v170_v29 = vld [vmem:[#allocation8 + $0x28] sm:$0xff]  ;;  %v169_v30 = vld [vmem:[#allocation8 + $0x20] sm:$0xff]  ;;  %v168_v31 = vld [vmem:[#allocation8 + $0x18] sm:$0xff] }
  0x1e   :  { %187 = vmatpush.msra.mxu2 %v178_v21  ;;  %v255_v32 = vld [vmem:[%s463_s2] ss:$0 sm:$0xff]  ;;  %v167_v37 = vld [vmem:[#allocation8 + $0x10] sm:$0xff]  ;;  %v165_v39 = vld [vmem:[#allocation8] sm:$0xff] }
  0x1f   :  { %147 = vmatpush.msra.mxu1 %v132_v8  ;;  %v166_v38 = vld [vmem:[#allocation8 + $0x8] sm:$0xff] }
  0x20   :  { %188 = vmatpush.msra.mxu2 %v177_v22  ;;  %v256_v40 = vld [vmem:[%s465_s4] ss:$0 sm:$0xff]  ;;  %s396_s4 = smov [#allocation10]  }
  0x21   :  { %148 = vmatpush.msra.mxu1 %v131_v9  ;;  %v257_v45 = vld [vmem:[%s467_s6] ss:$0 sm:$0xff]  ;;  %s233_s6 = sshll.u32 %s396_s4, 4  ;;  %s234_s6 = int_to_ptr.vmem [resolvable:$true] %s233_s6 }
  0x22   :  { %189 = vmatpush.msra.mxu2 %v176_v23 }
  0x23   :  { %149 = vmatpush.msra.mxu1 %v130_v10 }
  0x24   :  { %190 = vmatpush.msra.mxu2 %v175_v24 }
  0x25   :  { %150 = vmatpush.msra.mxu1 %v129_v11 }
  0x26   :  { %191 = vmatpush.msra.mxu2 %v174_v25 }
  0x27   :  { %151 = vmatpush.msra.mxu1 %v128_v12 }
  0x28   :  { %192 = vmatpush.msra.mxu2 %v173_v26 }
  0x29   :  { %152 = vmatpush.msra.mxu1 %v127_v13 }
  0x2a   :  { %193 = vmatpush.msra.mxu2 %v172_v27 }
  0x2b   :  { %153 = vmatpush.msra.mxu1 %v126_v14 }
  0x2c   :  { %194 = vmatpush.msra.mxu2 %v171_v28 }
  0x2d   :  { %154 = vmatpush.msra.mxu1 %v125_v15 }
  0x2e   :  { %195 = vmatpush.msra.mxu2 %v170_v29 }
  0x2f   :  { %155 = vmatpush.msra.mxu1 %v124_v16 }
  0x30   :  { %196 = vmatpush.msra.mxu2 %v169_v30 }
  0x31   :  { %156 = vmatpush.msra.mxu1 %v123_v17 }
  0x32   :  { %197 = vmatpush.msra.mxu2 %v168_v31 }
  0x33   :  { %157 = vmatpush.msra.mxu1 %v122_v18 }
  0x34   :  { %198 = vmatpush.msra.mxu2 %v167_v37 }
  0x36   :  { %199 = vmatpush.msra.mxu2 %v166_v38 }
  0x38   :  { %200 = vmatpush.msra.mxu2 %v165_v39 }
  0x94   :  { %v116_v33 = vpop.f32.mrf.mxu0 }
  0x95   :  { %v117_v34 = vadd.f32 %v255_v32, %v116_v33 }
  0x97   :  { %vm119_vm1 = vcmp.ge.f32.partialorder %v117_v34, 0.0  ;;  %v120_v35 = vmul.f32 0.01, %v117_v34 }
  0x99   :  { %v121_v36 = vsel %vm119_vm1, %v117_v34, %v120_v35 }
  0x9a   :  { %158 = vmatmul.f32.vlgmr.msra.gmra.mxu1 %v121_v36 }
 0x117   :  { %v159_v41 = vpop.f32.mrf.mxu1 }
 0x118   :  { %v160_v42 = vadd.f32 %v256_v40, %v159_v41 }
 0x11a   :  { %vm162_vm2 = vcmp.ge.f32.partialorder %v160_v42, 0.0  ;;  %v163_v43 = vmul.f32 0.01, %v160_v42 }
 0x11c   :  { %v164_v44 = vsel %vm162_vm2, %v160_v42, %v163_v43 }
 0x11d   :  { %201 = vmatmul.f32.vlgmr.msra.gmra.mxu2 %v164_v44 }
 0x1a0   :  { %v202_v46 = vpop.f32.mrf.mxu2 }
 0x1a1   :  { %v203_v47 = vadd.f32 %v257_v45, %v202_v46 }
 0x1a3   :  { %205 = vmax.xlane.f32.xlu0 %v203_v47 }
 0x216   :  { %v206_v48 = vpop.xlane.xlu0 %205 }
 0x217   :  { %v207_v49 = vsub.f32 %v203_v47, %v206_v48 }
 0x219   :  { %v208_v50 = vmul.f32 1.442695, %v207_v49 }
 0x21b   :  { %258 = vpow2.f32 %v208_v50 }
 0x221   :  { %v259_v51 = vpop.eup %258 }
 0x222   :  { %210 = vadd.xlane.f32.xlu0 %v259_v51 }
 0x295   :  { %v211_v52 = vpop.xlane.xlu0 %210 }
 0x296   :  { %260 = vrcp.f32 %v211_v52  ;;  %v223_v56 = vand.u32 2147483648, %v211_v52  ;;  %v221_v58 = vand.u32 2147483647, %v211_v52  ;;  %vm217_vm4 = vweird.f32 %v211_v52 }
 0x298   :  { %v224_v60 = vor.u32 1.1754944e-38, %v223_v56  ;;  %vm222_vm6 = vcmp.eq.f32.partialorder %v221_v58, 8.507059e+37 }
 0x29c   :  { %v261_v53 = vpop.eup %260 }
 0x29d   :  { %v213_v54 = vmul.f32 %v261_v53, %v211_v52  ;;  %vm218_vm3 = vweird.f32 %v261_v53 }
 0x29e   :  { %vm219_vm5 = vmor %vm217_vm4, %vm218_vm3 }
 0x29f   :  { %v214_v55 = vsub.f32 1.0, %v213_v54 }
 0x2a1   :  { %v215_v57 = vmul.f32 %v261_v53, %v214_v55 }
 0x2a3   :  { %v216_v59 = vadd.f32 %v261_v53, %v215_v57 }
 0x2a5   :  { %v220_v61 = vsel %vm219_vm5, %v261_v53, %v216_v59 }
 0x2a6   :  { %v225_v62 = vsel %vm222_vm6, %v224_v60, %v220_v61 }
 0x2a7   :  { %v226_v63 = vmul.f32 %v259_v51, %v225_v62 }
 0x2a9   :  { %227 = vst [vmem:[#allocation10] sm:$0xff] %v226_v63 }
 0x2aa   :  { %238 = dma.vmem_to_hbm [thread:$0]  %s234_s6, 128, %s236_s26, [#allocation4]  }
 0x2ab   :  { %388 = dma.done.wait [#allocation4], 128  }
 0x2ac   :  { %389 = vsyncadd [#allocation4], 4294967168 }
 0x2ad   :  { %243 = vsyncpa [#allocation3], 1 }
 0x2ae   :  { %244 = vsyncpa [#allocation6], 1 }
 0x2af   :  { %245 = vsyncpa [#allocation9], 1 }
 0x2b0   :  { %246 = vsyncpa [#allocation4], 1 }

</bundles_post_ra>
